<compile_context>
chip_gen: v6e
topology: v6e:2x2x1
jax: 0.10.0
libtpu: 0.0.40
codegen_flags: <defaults>
</compile_context>

<pallas_src>
import jax
import jax.numpy as jnp
from jax.experimental import pallas as pl
from jax.experimental.pallas import tpu as pltpu

IN_PLANES = 2048
BN_EPS = 1e-5       # nn.BatchNorm1d default eps
L2_EPS = 1e-12      # F.normalize default eps


def _round_up(x, m):
    return -(-x // m) * m


def _ceil_div(a, b):
    return -(-a // b)


def _largest_divisor_leq(n, cap):
    best = 1
    for d in range(1, min(n, max(1, cap)) + 1):
        if n % d == 0:
            best = d
    return best


def _vmem_capacity_bytes():
    """Per-TensorCore VMEM capacity; conservative 64 MiB fallback."""
    try:
        cap = int(pltpu.get_tpu_info().vmem_capacity_bytes)
        if cap > 0:
            return cap
    except Exception:
        pass
    return 64 << 20


def _pick_tiles(b, hw, c, itemsize, vmem_cap, force_hwt=None):
    """Pick (batch tile, spatial tile) with padded-byte-aware VMEM accounting.

    The input block is (Bt, HWt, C) channels-last: C is lane-dense, HWt sits
    on sublanes and pads to the dtype sublane tile (8 for f32, 16 for bf16)."""
    sublane = {4: 8, 2: 16, 1: 32}.get(itemsize, 8)

    def img_bytes(rows):                      # padded bytes of one image tile
        return _round_up(rows, sublane) * c * itemsize

    # Budget for ONE input block (it gets double/triple buffered); leaves room
    # for the resident output block, scratch, scale/shift and internal buffers.
    block_budget = max(1 << 20, min(int(vmem_cap * 0.30), 40 << 20))

    if force_hwt is not None:
        hwt = min(int(force_hwt), hw)
        if hwt != hw:                         # BlockSpec: divisible by 8 or == HW
            hwt = max(8, (hwt // 8) * 8)
    elif img_bytes(hw) <= block_budget:
        hwt = hw                              # whole spatial extent in one block
    else:
        rows = (block_budget // (c * itemsize)) // sublane * sublane
        hwt = int(max(8, min(rows, (hw // 8) * 8)))

    per_img = img_bytes(hwt)
    cap_imgs = max(1, block_budget // per_img)
    # v7x (2 TensorCores/chip, ~64 MiB VMEM per TC): keep >= 2 steps on the
    # "parallel" batch axis so the grid shards across both cores.  v5e/v6e are
    # single-TC (128 MiB VMEM), so splitting would only add per-step overhead.
    if vmem_cap <= (64 << 20) and b >= 2:
        cap_imgs = min(cap_imgs, b // 2)
    bt = _largest_divisor_leq(b, cap_imgs)
    return bt, hwt, sublane


def _make_aap_lbn_kernel(hw, hwt, mask_tail):
    """Grid = (batch tiles [parallel], spatial tiles [arbitrary reduction])."""

    def kernel(alpha_ref, x_ref, scale_ref, shift_ref, out_ref, acc_ref):
        h = pl.program_id(1)

        @pl.when(h == 0)
        def _init():
            acc_ref[...] = jnp.full_like(acc_ref, -jnp.inf)

        x = x_ref[...]                                        # (Bt, HWt, C) input dtype
        if mask_tail:
            rows = jax.lax.broadcasted_iota(jnp.int32, x.shape[1:], 0)  # (HWt, C)
            valid = (h * hwt + rows) < hw
            x = jnp.where(valid[None, :, :], x, jnp.asarray(-jnp.inf, x.dtype))

        # AAPooling: AdaptiveMaxPool2d(1) -> running max over spatial (sublane)
        # axis; stay in the input dtype, cast only the (Bt, C) reduced tile.
        step_max = jnp.max(x, axis=1)                         # (Bt, C)
        acc_ref[...] = jnp.maximum(acc_ref[...], step_max.astype(jnp.float32))

        @pl.when(h == pl.num_programs(1) - 1)
        def _finalize():
            pooled = acc_ref[...]                             # (Bt, C) f32
            # LBNNeck: triplet = F.normalize(pooled, p=2, dim=1) * alpha
            sq = jnp.sum(pooled * pooled, axis=1, keepdims=True)
            inv_norm = alpha_ref[0] * jax.lax.rsqrt(jnp.maximum(sq, L2_EPS * L2_EPS))
            triplet = pooled * inv_norm
            # LBNNeck: eval BatchNorm1d, pre-folded into scale/shift.
            test = triplet * scale_ref[...] + shift_ref[...]  # (Bt, C)
            out_ref[...] = jnp.expand_dims(test, 1).astype(out_ref.dtype)

    return kernel


def init_params(c: int):
    """Deterministic init matching the PyTorch module __init__: alpha = ones(1);
    BN weight=1, bias=0 (weights_init_kaiming), running stats at defaults."""
    return {
        "alpha": jnp.ones((1,), jnp.float32),
        "bn_weight": jnp.ones((c,), jnp.float32),
        "bn_bias": jnp.zeros((c,), jnp.float32),
        "bn_running_mean": jnp.zeros((c,), jnp.float32),
        "bn_running_var": jnp.ones((c,), jnp.float32),
    }


def baseline_forward(feat, params, data_format="NCHW", spatial_tile=None):
    """feat: backbone feature map, [B, C, H, W] (NCHW, as produced by the
    PyTorch backbone) or [B, H, W, C] (NHWC, preferred — no transpose pass).
    Returns the eval-mode LBNNeck feature [B, C] f32."""
    if data_format == "NCHW":
        B, C, H, W = feat.shape
        # One extra HBM pass to go channels-last, but it makes every VMEM tile,
        # vreg and the output lane-dense (C = 2048 = 16 * 128), which is a net
        # win for ResNet50's small spatial maps.  NHWC producers skip this.
        x = jnp.transpose(feat.reshape(B, C, H * W), (0, 2, 1))
    elif data_format == "NHWC":
        B, H, W, C = feat.shape
        x = feat.reshape(B, H * W, C)
    else:
        raise ValueError(f"unsupported data_format: {data_format}")
    HW = H * W

    # Fold eval-mode BatchNorm1d into scale/shift vectors.
    inv_std = jax.lax.rsqrt(params["bn_running_var"].astype(jnp.float32) + BN_EPS)
    scale_v = params["bn_weight"].astype(jnp.float32) * inv_std
    shift_v = (params["bn_bias"].astype(jnp.float32)
               - params["bn_running_mean"].astype(jnp.float32) * scale_v)
    scale = scale_v.reshape(1, C)
    shift = shift_v.reshape(1, C)
    alpha = params["alpha"].astype(jnp.float32)

    itemsize = jnp.dtype(x.dtype).itemsize
    vmem_cap = _vmem_capacity_bytes()
    Bt, HWt, sublane = _pick_tiles(B, HW, C, itemsize, vmem_cap, force_hwt=spatial_tile)

    n_h = _ceil_div(HW, HWt)
    mask_tail = (HW % HWt) != 0
    grid = (B // Bt, n_h)

    # Padded-byte-aware VMEM accounting (sublane padding of the HWt axis).
    x_block_bytes = Bt * _round_up(HWt, sublane) * C * itemsize
    misc = 4 * Bt * C * 4 + 4 * C * 4 + (4 << 20)
    cap_limit = max(40 << 20, int(vmem_cap * 0.85))
    deep = (n_h >= 8) and (3 * x_block_bytes + misc <= cap_limit)
    n_buf = 3 if deep else 2
    vmem_limit = int(min(max(32 << 20, n_buf * x_block_bytes + misc), cap_limit))

    x_index_map = lambda b, h: (b, h, 0)
    if deep:
        x_spec = pl.BlockSpec((Bt, HWt, C), x_index_map, pipeline_mode=pl.Buffered(3))
    else:
        x_spec = pl.BlockSpec((Bt, HWt, C), x_index_map)

    kernel = _make_aap_lbn_kernel(HW, HWt, mask_tail)

    out = pl.pallas_call(
        kernel,
        out_shape=jax.ShapeDtypeStruct((B, 1, C), jnp.float32),
        grid_spec=pltpu.PrefetchScalarGridSpec(
            num_scalar_prefetch=0,
            grid=grid,
            in_specs=[
                pl.BlockSpec(memory_space=pltpu.MemorySpace.SMEM),  # alpha (1,)
                x_spec,                                             # feature map
                pl.BlockSpec((1, C), lambda b, h: (0, 0)),          # BN scale
                pl.BlockSpec((1, C), lambda b, h: (0, 0)),          # BN shift
            ],
            out_specs=pl.BlockSpec((Bt, 1, C), lambda b, h: (b, 0, 0)),
            scratch_shapes=[pltpu.VMEM((Bt, C), jnp.float32)],      # running max
        ),
        compiler_params=pltpu.CompilerParams(
            dimension_semantics=("parallel", "arbitrary"),
            vmem_limit_bytes=vmem_limit),
    )(alpha, x, scale, shift)

    return out.reshape(B, C)


def _reference(feat_nchw, params):
    B, C, H, W = feat_nchw.shape
    pooled = jnp.max(feat_nchw.reshape(B, C, H * W).astype(jnp.float32), axis=-1)
    nrm = jnp.maximum(
        jnp.sqrt(jnp.sum(pooled * pooled, axis=1, keepdims=True)), L2_EPS)
    triplet = pooled / nrm * params["alpha"][0]
    inv_std = 1.0 / jnp.sqrt(params["bn_running_var"].astype(jnp.float32) + BN_EPS)
    return ((triplet - params["bn_running_mean"]) * inv_std
            * params["bn_weight"] + params["bn_bias"])


if __name__ == "__main__":
    key = jax.random.PRNGKey(0)
    k1, k2, k3, k4, k5 = jax.random.split(key, 5)

    # Small batch/spatial; channel dim fixed at 2048 by the module (7x7 is the
    # native ResNet50 output spatial size).
    B, C, H, W = 2, IN_PLANES, 7, 7
    feat1 = jax.random.normal(k1, (B, C, H, W), dtype=jnp.float32)

    # Non-trivial BN stats / affine params so the folded scale/shift path is
    # actually exercised (module defaults would make it near-identity).
    params = {
        "alpha": jnp.full((1,), 1.3, jnp.float32),
        "bn_weight": 1.0 + 0.1 * jax.random.normal(k2, (C,), jnp.float32),
        "bn_bias": 0.1 * jax.random.normal(k3, (C,), jnp.float32),
        "bn_running_mean": 0.1 * jax.random.normal(k4, (C,), jnp.float32),
        "bn_running_var": jax.random.uniform(k5, (C,), jnp.float32, 0.5, 1.5),
    }

    ref = _reference(feat1, params)

    # Default path: whole 7x7 spatial extent in one lane-dense block.
    out = jax.block_until_ready(baseline_forward(feat1, params))
    assert out.shape == (B, C)
    assert jnp.allclose(out, ref, atol=1e-4, rtol=1e-4), "kernel/reference mismatch"

    # Exercise the masked-tail spatial tiling path (HW=49 split into 8-row tiles).
    out_tiled = jax.block_until_ready(
        baseline_forward(feat1, params, spatial_tile=8))
    assert jnp.allclose(out_tiled, ref, atol=1e-4, rtol=1e-4), \
        "masked-tail kernel/reference mismatch"

    print("KERNEL_OK")
</pallas_src>

<mosaic_0001>
module attributes {stable_mosaic.version = 11 : i64} {
  func.func @kernel(%arg0: i32, %arg1: i32, %arg2: memref<1xf32, #tpu.memory_space<smem>>, %arg3: memref<1x49x2048xf32, #tpu.memory_space<vmem>>, %arg4: memref<1x2048xf32, #tpu.memory_space<vmem>>, %arg5: memref<1x2048xf32, #tpu.memory_space<vmem>>, %arg6: memref<1x1x2048xf32, #tpu.memory_space<vmem>>, %arg7: memref<1x2048xf32, #tpu.memory_space<vmem>>) attributes {dimension_semantics = [#tpu.dimension_semantics<parallel>, #tpu.dimension_semantics<arbitrary>], iteration_bounds = array<i64: 2, 1>, scalar_prefetch = 0 : i64, scratch_operands = 1 : i64, tpu.core_type = #tpu.core_type<tc>, window_params = [{transform_indices = @transform_0, window_bounds = array<i64: 1>}, {transform_indices = @transform_1, window_bounds = array<i64: 1, 49, 2048>}, {pipeline_mode = #tpu.pipeline_mode<synchronous>, transform_indices = @transform_2, window_bounds = array<i64: 1, 2048>}, {pipeline_mode = #tpu.pipeline_mode<synchronous>, transform_indices = @transform_3, window_bounds = array<i64: 1, 2048>}, {transform_indices = @transform_4, window_bounds = array<i64: 1, 1, 2048>}]} {
    %c0_i32 = arith.constant 0 : i32
    %0 = arith.cmpi eq, %arg1, %c0_i32 : i32
    %1 = arith.extui %0 : i1 to i32
    %c0_i32_0 = arith.constant 0 : i32
    %2 = arith.cmpi ne, %1, %c0_i32_0 : i32
    scf.if %2 {
      %cst_9 = arith.constant 0xFF800000 : f32
      %11 = vector.broadcast %cst_9 : f32 to vector<1x2048xf32>
      %c0_10 = arith.constant 0 : index
      %c0_11 = arith.constant 0 : index
      %12 = vector.load %arg7[%c0_10, %c0_11] : memref<1x2048xf32, #tpu.memory_space<vmem>>, vector<1x2048xf32>
      tpu.vector_store %arg7[%c0_10, %c0_11], %11 {strides = array<i32>} : memref<1x2048xf32, #tpu.memory_space<vmem>>, vector<1x2048xf32>,
    } else {
    }
    %c0 = arith.constant 0 : index
    %c0_1 = arith.constant 0 : index
    %c0_2 = arith.constant 0 : index
    %3 = vector.load %arg3[%c0, %c0_1, %c0_2] : memref<1x49x2048xf32, #tpu.memory_space<vmem>>, vector<1x49x2048xf32>
    %cst = arith.constant dense<0xFF800000> : vector<1x2048xf32>
    %4 = vector.multi_reduction <maximumf>, %3, %cst [1] : vector<1x49x2048xf32> to vector<1x2048xf32>
    %c0_3 = arith.constant 0 : index
    %c0_4 = arith.constant 0 : index
    %5 = vector.load %arg7[%c0_3, %c0_4] : memref<1x2048xf32, #tpu.memory_space<vmem>>, vector<1x2048xf32>
    %6 = arith.maximumf %5, %4 : vector<1x2048xf32>
    %c0_5 = arith.constant 0 : index
    %c0_6 = arith.constant 0 : index
    %7 = vector.load %arg7[%c0_5, %c0_6] : memref<1x2048xf32, #tpu.memory_space<vmem>>, vector<1x2048xf32>
    tpu.vector_store %arg7[%c0_5, %c0_6], %6 {strides = array<i32>} : memref<1x2048xf32, #tpu.memory_space<vmem>>, vector<1x2048xf32>,
    %c0_i32_7 = arith.constant 0 : i32
    %8 = arith.cmpi eq, %arg1, %c0_i32_7 : i32
    %9 = arith.extui %8 : i1 to i32
    %c0_i32_8 = arith.constant 0 : i32
    %10 = arith.cmpi ne, %9, %c0_i32_8 : i32
    scf.if %10 {
      %c0_9 = arith.constant 0 : index
      %c0_10 = arith.constant 0 : index
      %11 = vector.load %arg7[%c0_9, %c0_10] : memref<1x2048xf32, #tpu.memory_space<vmem>>, vector<1x2048xf32>
      %12 = arith.mulf %11, %11 : vector<1x2048xf32>
      %cst_11 = arith.constant dense<0.000000e+00> : vector<1xf32>
      %13 = vector.multi_reduction <add>, %12, %cst_11 [1] : vector<1x2048xf32> to vector<1xf32>
      %14 = vector.shape_cast %13 : vector<1xf32> to vector<1x1xf32>
      %c0_12 = arith.constant 0 : index
      %15 = memref.load %arg2[%c0_12] : memref<1xf32, #tpu.memory_space<smem>>
      %cst_13 = arith.constant 1.000000e-24 : f32
      %16 = vector.broadcast %cst_13 : f32 to vector<1x1xf32>
      %17 = arith.maximumf %14, %16 : vector<1x1xf32>
      %18 = math.rsqrt %17 : vector<1x1xf32>
      %19 = vector.broadcast %15 : f32 to vector<1x1xf32>
      %20 = arith.mulf %19, %18 : vector<1x1xf32>
      %21 = vector.broadcast %20 : vector<1x1xf32> to vector<1x2048xf32>
      %22 = arith.mulf %11, %21 : vector<1x2048xf32>
      %c0_14 = arith.constant 0 : index
      %c0_15 = arith.constant 0 : index
      %23 = vector.load %arg4[%c0_14, %c0_15] : memref<1x2048xf32, #tpu.memory_space<vmem>>, vector<1x2048xf32>
      %24 = arith.mulf %22, %23 : vector<1x2048xf32>
      %c0_16 = arith.constant 0 : index
      %c0_17 = arith.constant 0 : index
      %25 = vector.load %arg5[%c0_16, %c0_17] : memref<1x2048xf32, #tpu.memory_space<vmem>>, vector<1x2048xf32>
      %26 = arith.addf %24, %25 : vector<1x2048xf32>
      %27 = vector.shape_cast %26 : vector<1x2048xf32> to vector<1x1x2048xf32>
      %c0_18 = arith.constant 0 : index
      %c0_19 = arith.constant 0 : index
      %c0_20 = arith.constant 0 : index
      %28 = vector.load %arg6[%c0_18, %c0_19, %c0_20] : memref<1x1x2048xf32, #tpu.memory_space<vmem>>, vector<1x1x2048xf32>
      tpu.vector_store %arg6[%c0_18, %c0_19, %c0_20], %27 {strides = array<i32>} : memref<1x1x2048xf32, #tpu.memory_space<vmem>>, vector<1x1x2048xf32>,
    } else {
    }
    return
  }
  func.func @transform_0(%arg0: i32, %arg1: i32) -> i32 {
    %c0_i32 = arith.constant 0 : i32
    %c0_i32_0 = arith.constant 0 : i32
    return %c0_i32 : i32
  }
  func.func @transform_1(%arg0: i32, %arg1: i32) -> (i32, i32, i32) {
    %c0_i32 = arith.constant 0 : i32
    %c0_i32_0 = arith.constant 0 : i32
    return %arg0, %arg1, %c0_i32 : i32, i32, i32
  }
  func.func @transform_2(%arg0: i32, %arg1: i32) -> (i32, i32) {
    %c0_i32 = arith.constant 0 : i32
    %c0_i32_0 = arith.constant 0 : i32
    %c0_i32_1 = arith.constant 0 : i32
    return %c0_i32, %c0_i32_0 : i32, i32
  }
  func.func @transform_3(%arg0: i32, %arg1: i32) -> (i32, i32) {
    %c0_i32 = arith.constant 0 : i32
    %c0_i32_0 = arith.constant 0 : i32
    %c0_i32_1 = arith.constant 0 : i32
    return %c0_i32, %c0_i32_0 : i32, i32
  }
  func.func @transform_4(%arg0: i32, %arg1: i32) -> (i32, i32, i32) {
    %c0_i32 = arith.constant 0 : i32
    %c0_i32_0 = arith.constant 0 : i32
    %c0_i32_1 = arith.constant 0 : i32
    return %arg0, %c0_i32, %c0_i32_0 : i32, i32, i32
  }
}

</mosaic_0001>

<bundles_post_ra>
// kernel: tpu_custom_call.1
= control target key start
LH: loop header
LB: loop body
LE: loop exit
PB: predicated region body
PF: predicated region fallthrough
CT: control target
= control target key end

     0   :  { %s1661_s0 = inlined_call_operand.<no memory space> [shape: f32[1], index: 0, kind: input, shape index: {}]   ;;  %s1662_s1 = inlined_call_operand.vmem [shape: f32[2,49,2048], index: 1, kind: input, shape index: {}]   ;;  %s1663_s2 = inlined_call_operand.vmem [shape: f32[1,2048], index: 2, kind: input, shape index: {}]   ;;  %s1664_s3 = inlined_call_operand.vmem [shape: f32[1,2048], index: 3, kind: input, shape index: {}]   ;;  %s1665_s4 = inlined_call_operand.hbm [shape: f32[2,1,2048], index: 4, kind: output, shape index: {}]  }
   0x1   :  { %9 = sst [smem:[#allocation3]] %s1661_s0 }
   0x2   :  { %10 = vsyncpa [#allocation5], 0 }
   0x3   :  { %12 = vsyncpa [#allocation5 + $0x1], 0  ;;  %s1093_s17 = smov 0   ;;  %s1095_s18 = smov 0  }
   0x4   :  { %s1097_s19 = smov 0   ;;  %s1099_s20 = smov 0  }
   0x5   :  { %s1101_s21 = smov 0   ;;  %s1103_s22 = smov 0  }
   0x6 LB: > { %s913_s0 = sadd.s32 4294967295, %s1061_s22   ;;  %s914_s23 = sadd.s32 4294967294, %s1061_s22   ;;  %s1061_s22 = sphi %s1103_s22, %s18_s22   ;;  %s1057_s21 = sphi %s1101_s21, %s1672_s21   ;;  %s1053_s20 = sphi %s1099_s20, %s1671_s20   ;;  %s1049_s19 = sphi %s1097_s19, %s1670_s19   ;;  %s1045_s18 = sphi %s1095_s18, %s1669_s18   ;;  %s1041_s17 = sphi %s1093_s17, %s1668_s17  }
   0x7   : > { %s30_s24 = sadd.s32 1, %s1057_s21  ;;  %s128_s25 = sadd.s32 1, %s1049_s19 }
   0x8   : > { %p32_p0 = scmp.ge.s32.totalorder %s30_s24, 2  ;;  %p138_p1 = scmp.ne.s32.totalorder %s1049_s19, %s1045_s18 }
   0x9   : > { %p139_p2 = scmp.eq.s32.totalorder %s913_s0, 1  ;;  %p144_p3 = scmp.ne.s32.totalorder %s1045_s18, %s1041_s17 }
   0xa   : > { %s1674_s24 = smov (%p32_p0, %s30_s24), 0  ;;  %p145_p5 = scmp.eq.s32.totalorder %s914_s23, 1 }
   0xb   : > { %p1133_p4 = por %p139_p2, %p138_p1  ;;  %s125_s27 = ssub.s32 %s1057_s21, %s1674_s24 }
   0xc   : > { %p917_p6 = scmp.ge.s32.totalorder %s1061_s22, 1  ;;  %p126_p7 = scmp.eq.s32.totalorder %s125_s27, 0 }
   0xd   : > { %p1140_p8 = por %p145_p5, %p144_p3  ;;  %p186_p9 = scmp.lt.s32.totalorder %s1061_s22, 3 }
   0xe   : > { %s1146_s29 = scalar_select %p126_p7, %s1049_s19, %s128_s25  }
   0xf   : > { %p187_p10 = pnand %p917_p6, %p186_p9 }
  0x10   : > { %p218_p11 = scmp.lt.s32.totalorder (!%p187_p10), %s1053_s20, 1  ;;  %s799_s9 = sld [smem:[#allocation3]] (!%p187_p10) }
  0x11   : > { %190 = sbr.rel (%p187_p10) target bundleno = 315 (0x13b), region = 36  ;;  %s214_s10 = sand.u32 (!%p187_p10), 1, %s1045_s18  }
  0x12   : > { %s918_s11 = sshll.u32 (!%p187_p10), %s214_s10, 4  ;;  %s925_s27 = sshll.u32 (!%p187_p10), %s1053_s20, 8 }
  0x16   : > { %s219_s30 = scalar_select %p218_p11, %s1053_s20, 1  ;;  %v1063_v0 = vmov 1966171168   ;;  %v580_v2 = vlaneseq  ;;  %vm351_vm0 = vcmask 1040384  }
  0x17   : > { %v578_v1 = vunpack.c.l.s4 %v1063_v0  ;;  %s1064_s20 = smov [#allocation4]  }
  0x18   : > { %s926_s5 = smul.u32 896, %s219_s30  ;;  %v1179_v12 = vshrl.u32 %v580_v2, 7  ;;  %s216_s30 = scalar_lea.vmem [#allocation4], %s918_s11 }
  0x19   : > { %v579_v11 = vunpack.c.0.s8 %v578_v1  ;;  %s989_s11 = sshll.u32 %s1064_s20, 4  ;;  %s990_s11 = int_to_ptr.vmem [resolvable:$false] %s989_s11 }
  0x1a   : > { %s1153_s8 = scalar_lea.vmem %s1662_s1, %s926_s5  ;;  %s837_s5 = sshll.u32 %s216_s30, 4  ;;  %s838_s5 = int_to_ptr.vmem [resolvable:$true] %s837_s5 }
  0x1b   : > { %v1156_v3 = vld [vmem:[%s1153_s8] sm:$0xff]  ;;  %v1159_v4 = vld [vmem:[%s1153_s8 + $0x8] sm:$0xff]  ;;  %v1162_v5 = vld [vmem:[%s1153_s8 + $0x10] sm:$0xff]  ;;  %v1258_v41 = vsub.s32 %v579_v11, %v1179_v12  ;;  %s985_s12 = scalar_lea.vmem %s838_s5, 256  ;;  %s991_s13 = scalar_lea.vmem %s990_s11, 512 }
  0x1c   : > { %v1165_v6 = vld [vmem:[%s1153_s8 + $0x18] sm:$0xff]  ;;  %v1168_v7 = vld [vmem:[%s1153_s8 + $0x80] sm:$0xff]  ;;  %v1171_v8 = vld [vmem:[%s1153_s8 + $0x88] sm:$0xff]  ;;  %p986_p12 = scmp.ne.s32.totalorder %s838_s5, %s985_s12  ;;  %p992_p1 = scmp.lt.s32.totalorder %s838_s5, %s990_s11 }
  0x1d   : > { %v1174_v9 = vld [vmem:[%s1153_s8 + $0x90] sm:$0xff]  ;;  %v1177_v10 = vld [vmem:[%s1153_s8 + $0x98] sm:$0xff]  ;;  %v1182_v13 = vld [vmem:[%s1153_s8 + $0x20] sm:$0xff]  ;;  %v346_v46 = vmax.f32 %v1156_v3, %v1168_v7  ;;  %v360_v47 = vmax.f32 %v1159_v4, %v1171_v8  ;;  %p993_p2 = scmp.lt.s32.totalorder %s991_s13, %s985_s12 }
  0x1e   : > { %v1185_v14 = vld [vmem:[%s1153_s8 + $0x28] sm:$0xff]  ;;  %v1188_v15 = vld [vmem:[%s1153_s8 + $0x30] sm:$0xff]  ;;  %v1191_v16 = vld [vmem:[%s1153_s8 + $0x38] sm:$0xff]  ;;  %v373_v48 = vmax.f32 %v1162_v5, %v1174_v9  ;;  %v386_v49 = vmax.f32 %v1165_v6, %v1177_v10  ;;  %p987_p13 = pnand %p986_p12, %p1133_p4 }
  0x1f   : > { %v1194_v17 = vld [vmem:[%s1153_s8 + $0xa0] sm:$0xff]  ;;  %v1197_v18 = vld [vmem:[%s1153_s8 + $0xa8] sm:$0xff]  ;;  %v1200_v19 = vld [vmem:[%s1153_s8 + $0xb0] sm:$0xff]  ;;  %p994_p3 = por %p993_p2, %p992_p1 }
  0x20   : > { %v1203_v20 = vld [vmem:[%s1153_s8 + $0xb8] sm:$0xff]  ;;  %v1206_v21 = vld [vmem:[%s1153_s8 + $0x40] sm:$0xff]  ;;  %v1209_v22 = vld [vmem:[%s1153_s8 + $0x48] sm:$0xff]  ;;  %v399_v54 = vmax.f32 %v1182_v13, %v1194_v17  ;;  %v412_v55 = vmax.f32 %v1185_v14, %v1197_v18  ;;  %v425_v56 = vmax.f32 %v1188_v15, %v1200_v19  ;;  %p988_p0 = pneg %p987_p13 }
  0x21   : > { %v1212_v23 = vld [vmem:[%s1153_s8 + $0x50] sm:$0xff]  ;;  %v1215_v24 = vld [vmem:[%s1153_s8 + $0x58] sm:$0xff]  ;;  %v1218_v25 = vld [vmem:[%s1153_s8 + $0xc0] sm:$0xff]  ;;  %v438_v57 = vmax.f32 %v1191_v16, %v1203_v20 }
  0x22   : > { %v1221_v26 = vld [vmem:[%s1153_s8 + $0xc8] sm:$0xff]  ;;  %v1224_v27 = vld [vmem:[%s1153_s8 + $0xd0] sm:$0xff]  ;;  %v1227_v28 = vld [vmem:[%s1153_s8 + $0xd8] sm:$0xff]  ;;  %v451_v62 = vmax.f32 %v1206_v21, %v1218_v25  ;;  %p995_p5 = pnand %p994_p3, %p988_p0 }
  0x23   : > { %v1230_v29 = vld [vmem:[%s1153_s8 + $0x60] sm:$0xff]  ;;  %v1233_v30 = vld [vmem:[%s1153_s8 + $0x68] sm:$0xff]  ;;  %v1236_v31 = vld [vmem:[%s1153_s8 + $0x70] sm:$0xff]  ;;  %v464_v63 = vmax.f32 %v1209_v22, %v1221_v26  ;;  %v477_v0 = vmax.f32 %v1212_v23, %v1224_v27  ;;  %v490_v1 = vmax.f32 %v1215_v24, %v1227_v28 }
  0x24   : > { %v1239_v32 = vld [vmem:[%s1153_s8 + $0x78] sm:$0xff]  ;;  %v1242_v33 = vld [vmem:[%s1153_s8 + $0xe0] sm:$0xff]  ;;  %v1245_v34 = vld [vmem:[%s1153_s8 + $0xe8] sm:$0xff] }
  0x25   : > { %v1248_v35 = vld [vmem:[%s1153_s8 + $0xf0] sm:$0xff]  ;;  %v1251_v36 = vld [vmem:[%s1153_s8 + $0xf8] sm:$0xff]  ;;  %v266_v37 = vld [vmem:[%s1153_s8 + $0x100] sm:$0xff]  ;;  %v503_v6 = vmax.f32 %v1230_v29, %v1242_v33  ;;  %v516_v7 = vmax.f32 %v1233_v30, %v1245_v34 }
  0x26   : > { %v267_v38 = vld [vmem:[%s1153_s8 + $0x108] sm:$0xff]  ;;  %v268_v39 = vld [vmem:[%s1153_s8 + $0x110] sm:$0xff]  ;;  %v269_v40 = vld [vmem:[%s1153_s8 + $0x118] sm:$0xff]  ;;  %v529_v8 = vmax.f32 %v1236_v31, %v1248_v35  ;;  %v542_v9 = vmax.f32 %v1239_v32, %v1251_v36  ;;  %v1328_v15 = vmax.f32 %v346_v46, %v266_v37 }
  0x27   : > { %v270_v42 = vld [vmem:[%s1153_s8 + $0x120] sm:$0xff]  ;;  %v271_v43 = vld [vmem:[%s1153_s8 + $0x128] sm:$0xff]  ;;  %v272_v44 = vld [vmem:[%s1153_s8 + $0x130] sm:$0xff]  ;;  %v1330_v16 = vmax.f32 %v360_v47, %v267_v38  ;;  %v1332_v17 = vmax.f32 %v373_v48, %v268_v39  ;;  %v1334_v18 = vmax.f32 %v386_v49, %v269_v40 }
  0x28   : > { %v273_v45 = vld [vmem:[%s1153_s8 + $0x138] sm:$0xff]  ;;  %v274_v50 = vld [vmem:[%s1153_s8 + $0x140] sm:$0xff]  ;;  %v275_v51 = vld [vmem:[%s1153_s8 + $0x148] sm:$0xff]  ;;  %v400_v23 = vmax.f32 %v399_v54, %v270_v42  ;;  %v413_v24 = vmax.f32 %v412_v55, %v271_v43  ;;  %v426_v25 = vmax.f32 %v425_v56, %v272_v44 }
  0x29   : > { %v276_v52 = vld [vmem:[%s1153_s8 + $0x150] sm:$0xff]  ;;  %v277_v53 = vld [vmem:[%s1153_s8 + $0x158] sm:$0xff]  ;;  %v278_v58 = vld [vmem:[%s1153_s8 + $0x160] sm:$0xff]  ;;  %v439_v26 = vmax.f32 %v438_v57, %v273_v45  ;;  %v452_v31 = vmax.f32 %v451_v62, %v274_v50  ;;  %v465_v32 = vmax.f32 %v464_v63, %v275_v51 }
  0x2a   : > { %v279_v59 = vld [vmem:[%s1153_s8 + $0x168] sm:$0xff]  ;;  %v280_v60 = vld [vmem:[%s1153_s8 + $0x170] sm:$0xff]  ;;  %v281_v61 = vld [vmem:[%s1153_s8 + $0x178] sm:$0xff]  ;;  %v478_v33 = vmax.f32 %v477_v0, %v276_v52  ;;  %v491_v34 = vmax.f32 %v490_v1, %v277_v53  ;;  %v504_v39 = vmax.f32 %v503_v6, %v278_v58 }
  0x2b   : > { %v1297_v2 = vld [vmem:[%s1153_s8 + $0x180] sm:$0xff]  ;;  %v1300_v3 = vld [vmem:[%s1153_s8 + $0x188] sm:$0xff]  ;;  %v1303_v4 = vld [vmem:[%s1153_s8 + $0x190] sm:$0xff]  ;;  %v517_v40 = vmax.f32 %v516_v7, %v279_v59  ;;  %v530_v42 = vmax.f32 %v529_v8, %v280_v60  ;;  %v543_v43 = vmax.f32 %v542_v9, %v281_v61 }
  0x2c   : > { %v1306_v5 = vld [vmem:[%s1153_s8 + $0x198] sm:$0xff]  ;;  %v1317_v10 = vld [vmem:[%s1153_s8 + $0x1a0] sm:$0xff]  ;;  %v1320_v11 = vld [vmem:[%s1153_s8 + $0x1a8] sm:$0xff]  ;;  %v348_v48 = vmax.f32 %v1328_v15, %v1297_v2  ;;  %v362_v49 = vmax.f32 %v1330_v16, %v1300_v3  ;;  %v375_v50 = vmax.f32 %v1332_v17, %v1303_v4 }
  0x2d   : > { %v1323_v13 = vld [vmem:[%s1153_s8 + $0x1b0] sm:$0xff]  ;;  %v1326_v14 = vld [vmem:[%s1153_s8 + $0x1b8] sm:$0xff]  ;;  %v1337_v19 = vld [vmem:[%s1153_s8 + $0x1c0] sm:$0xff]  ;;  %v388_v51 = vmax.f32 %v1334_v18, %v1306_v5  ;;  %v401_v56 = vmax.f32 %v400_v23, %v1317_v10  ;;  %v414_v57 = vmax.f32 %v413_v24, %v1320_v11 }
  0x2e   : > { %v1340_v20 = vld [vmem:[%s1153_s8 + $0x1c8] sm:$0xff]  ;;  %v1343_v21 = vld [vmem:[%s1153_s8 + $0x1d0] sm:$0xff]  ;;  %v1346_v22 = vld [vmem:[%s1153_s8 + $0x1d8] sm:$0xff]  ;;  %v427_v58 = vmax.f32 %v426_v25, %v1323_v13  ;;  %v440_v59 = vmax.f32 %v439_v26, %v1326_v14  ;;  %v453_v63 = vmax.f32 %v452_v31, %v1337_v19 }
  0x2f   : > { %v1349_v27 = vld [vmem:[%s1153_s8 + $0x1e0] sm:$0xff]  ;;  %v1352_v28 = vld [vmem:[%s1153_s8 + $0x1e8] sm:$0xff]  ;;  %v1355_v29 = vld [vmem:[%s1153_s8 + $0x1f0] sm:$0xff]  ;;  %v466_v0 = vmax.f32 %v465_v32, %v1340_v20  ;;  %v479_v1 = vmax.f32 %v478_v33, %v1343_v21  ;;  %v492_v2 = vmax.f32 %v491_v34, %v1346_v22 }
  0x30   : > { %v1358_v30 = vld [vmem:[%s1153_s8 + $0x1f8] sm:$0xff]  ;;  %v298_v35 = vld [vmem:[%s1153_s8 + $0x200] sm:$0xff]  ;;  %v299_v36 = vld [vmem:[%s1153_s8 + $0x208] sm:$0xff]  ;;  %v505_v6 = vmax.f32 %v504_v39, %v1349_v27  ;;  %v518_v7 = vmax.f32 %v517_v40, %v1352_v28  ;;  %v531_v8 = vmax.f32 %v530_v42, %v1355_v29 }
  0x31   : > { %v300_v37 = vld [vmem:[%s1153_s8 + $0x210] sm:$0xff]  ;;  %v301_v38 = vld [vmem:[%s1153_s8 + $0x218] sm:$0xff]  ;;  %v302_v44 = vld [vmem:[%s1153_s8 + $0x220] sm:$0xff]  ;;  %v544_v9 = vmax.f32 %v543_v43, %v1358_v30  ;;  %v349_v14 = vmax.f32 %v348_v48, %v298_v35  ;;  %v363_v15 = vmax.f32 %v362_v49, %v299_v36 }
  0x32   : > { %v303_v45 = vld [vmem:[%s1153_s8 + $0x228] sm:$0xff]  ;;  %v304_v46 = vld [vmem:[%s1153_s8 + $0x230] sm:$0xff]  ;;  %v305_v47 = vld [vmem:[%s1153_s8 + $0x238] sm:$0xff]  ;;  %v376_v16 = vmax.f32 %v375_v50, %v300_v37  ;;  %v389_v17 = vmax.f32 %v388_v51, %v301_v38  ;;  %v402_v21 = vmax.f32 %v401_v56, %v302_v44 }
  0x33   : > { %v306_v52 = vld [vmem:[%s1153_s8 + $0x240] sm:$0xff]  ;;  %v307_v53 = vld [vmem:[%s1153_s8 + $0x248] sm:$0xff]  ;;  %v308_v54 = vld [vmem:[%s1153_s8 + $0x250] sm:$0xff]  ;;  %v415_v22 = vmax.f32 %v414_v57, %v303_v45  ;;  %v428_v23 = vmax.f32 %v427_v58, %v304_v46  ;;  %v441_v24 = vmax.f32 %v440_v59, %v305_v47 }
  0x34   : > { %v309_v55 = vld [vmem:[%s1153_s8 + $0x258] sm:$0xff]  ;;  %v310_v60 = vld [vmem:[%s1153_s8 + $0x260] sm:$0xff]  ;;  %v311_v61 = vld [vmem:[%s1153_s8 + $0x268] sm:$0xff]  ;;  %v1425_v28 = vmax.f32 %v453_v63, %v306_v52  ;;  %v1427_v29 = vmax.f32 %v466_v0, %v307_v53  ;;  %v1429_v30 = vmax.f32 %v479_v1, %v308_v54 }
  0x35   : > { %v312_v62 = vld [vmem:[%s1153_s8 + $0x270] sm:$0xff]  ;;  %v313_v3 = vld [vmem:[%s1153_s8 + $0x278] sm:$0xff]  ;;  %v1393_v4 = vld [vmem:[%s1153_s8 + $0x280] sm:$0xff]  ;;  %v1431_v31 = vmax.f32 %v492_v2, %v309_v55  ;;  %v1442_v35 = vmax.f32 %v505_v6, %v310_v60  ;;  %v1444_v36 = vmax.f32 %v518_v7, %v311_v61 }
  0x36   : > { %v1396_v5 = vld [vmem:[%s1153_s8 + $0x288] sm:$0xff]  ;;  %v316_v10 = vld [vmem:[%s1153_s8 + $0x290] sm:$0xff]  ;;  %v317_v11 = vld [vmem:[%s1153_s8 + $0x298] sm:$0xff]  ;;  %v1446_v37 = vmax.f32 %v531_v8, %v312_v62  ;;  %v1448_v38 = vmax.f32 %v544_v9, %v313_v3  ;;  %v350_v43 = vmax.f32 %v349_v14, %v1393_v4 }
  0x37   : > { %v1405_v13 = vld [vmem:[%s1153_s8 + $0x2a0] sm:$0xff]  ;;  %v1408_v18 = vld [vmem:[%s1153_s8 + $0x2a8] sm:$0xff]  ;;  %v1411_v19 = vld [vmem:[%s1153_s8 + $0x2b0] sm:$0xff]  ;;  %v364_v44 = vmax.f32 %v363_v15, %v1396_v5  ;;  %v377_v45 = vmax.f32 %v376_v16, %v316_v10  ;;  %v390_v46 = vmax.f32 %v389_v17, %v317_v11 }
  0x38   : > { %v1414_v20 = vld [vmem:[%s1153_s8 + $0x2b8] sm:$0xff]  ;;  %v1417_v25 = vld [vmem:[%s1153_s8 + $0x2c0] sm:$0xff]  ;;  %v1420_v26 = vld [vmem:[%s1153_s8 + $0x2c8] sm:$0xff]  ;;  %v403_v50 = vmax.f32 %v402_v21, %v1405_v13  ;;  %v416_v51 = vmax.f32 %v415_v22, %v1408_v18  ;;  %v429_v52 = vmax.f32 %v428_v23, %v1411_v19 }
  0x39   : > { %v1423_v27 = vld [vmem:[%s1153_s8 + $0x2d0] sm:$0xff]  ;;  %v1434_v32 = vld [vmem:[%s1153_s8 + $0x2d8] sm:$0xff]  ;;  %v1437_v33 = vld [vmem:[%s1153_s8 + $0x2e0] sm:$0xff]  ;;  %v442_v53 = vmax.f32 %v441_v24, %v1414_v20  ;;  %v455_v55 = vmax.f32 %v1425_v28, %v1417_v25  ;;  %v468_v56 = vmax.f32 %v1427_v29, %v1420_v26 }
  0x3a   : > { %v1440_v34 = vld [vmem:[%s1153_s8 + $0x2e8] sm:$0xff]  ;;  %v1451_v39 = vld [vmem:[%s1153_s8 + $0x2f0] sm:$0xff]  ;;  %v1454_v40 = vld [vmem:[%s1153_s8 + $0x2f8] sm:$0xff]  ;;  %v481_v57 = vmax.f32 %v1429_v30, %v1423_v27  ;;  %v494_v58 = vmax.f32 %v1431_v31, %v1434_v32  ;;  %v507_v62 = vmax.f32 %v1442_v35, %v1437_v33 }
  0x3b   : > { %v330_v42 = vld [vmem:[%s1153_s8 + $0x300] sm:$0x1]  ;;  %v331_v47 = vld [vmem:[%s1153_s8 + $0x308] sm:$0x1]  ;;  %v332_v48 = vld [vmem:[%s1153_s8 + $0x310] sm:$0x1]  ;;  %v520_v63 = vmax.f32 %v1444_v36, %v1440_v34  ;;  %v533_v0 = vmax.f32 %v1446_v37, %v1451_v39  ;;  %v546_v1 = vmax.f32 %v1448_v38, %v1454_v40 }
  0x3c   : > { %v333_v49 = vld [vmem:[%s1153_s8 + $0x318] sm:$0x1]  ;;  %v334_v54 = vld [vmem:[%s1153_s8 + $0x320] sm:$0x1]  ;;  %v335_v59 = vld [vmem:[%s1153_s8 + $0x328] sm:$0x1] }
  0x3d   : > { %v336_v60 = vld [vmem:[%s1153_s8 + $0x330] sm:$0x1]  ;;  %v337_v61 = vld [vmem:[%s1153_s8 + $0x338] sm:$0x1]  ;;  %v352_v2 = vsel %vm351_vm0, %v330_v42, -inf  ;;  %v365_v3 = vsel %vm351_vm0, %v331_v47, -inf }
  0x3e   : > { %v378_v4 = vsel %vm351_vm0, %v332_v48, -inf  ;;  %v391_v5 = vsel %vm351_vm0, %v333_v49, -inf  ;;  %v353_v6 = vmax.f32 %v350_v43, %v352_v2  ;;  %v366_v7 = vmax.f32 %v364_v44, %v365_v3 }
  0x3f   : > { %v379_v8 = vmax.f32 %v377_v45, %v378_v4  ;;  %v392_v9 = vmax.f32 %v390_v46, %v391_v5  ;;  %v404_v10 = vsel %vm351_vm0, %v334_v54, -inf  ;;  %v417_v11 = vsel %vm351_vm0, %v335_v59, -inf }
  0x40   : > { %v430_v13 = vsel %vm351_vm0, %v336_v60, -inf  ;;  %v443_v14 = vsel %vm351_vm0, %v337_v61, -inf  ;;  %v354_v15 = vrot.slane %v353_v6, 4  ;;  %v367_v16 = vrot.slane %v366_v7, 4 }
  0x41   : > { %v380_v17 = vrot.slane %v379_v8, 4  ;;  %v393_v18 = vrot.slane %v392_v9, 4  ;;  %v405_v19 = vmax.f32 %v403_v50, %v404_v10  ;;  %v418_v20 = vmax.f32 %v416_v51, %v417_v11 }
  0x42   : > { %v431_v21 = vmax.f32 %v429_v52, %v430_v13  ;;  %v444_v22 = vmax.f32 %v442_v53, %v443_v14  ;;  %v355_v23 = vmax.f32 %v353_v6, %v354_v15  ;;  %v368_v24 = vmax.f32 %v366_v7, %v367_v16  ;;  %v339_v14 = vld [vmem:[%s1153_s8 + $0x348] sm:$0x1]  ;;  %v340_v15 = vld [vmem:[%s1153_s8 + $0x350] sm:$0x1]  ;;  %v341_v16 = vld [vmem:[%s1153_s8 + $0x358] sm:$0x1] }
  0x43   : > { %v381_v42 = vmax.f32 %v379_v8, %v380_v17  ;;  %v394_v43 = vmax.f32 %v392_v9, %v393_v18  ;;  %v406_v44 = vrot.slane %v405_v19, 4  ;;  %v419_v45 = vrot.slane %v418_v20, 4  ;;  %v338_v8 = vld [vmem:[%s1153_s8 + $0x340] sm:$0x1] }
  0x44   : > { %v432_v46 = vrot.slane %v431_v21, 4  ;;  %v445_v47 = vrot.slane %v444_v22, 4  ;;  %v356_v48 = vrot.slane %v355_v23, 2  ;;  %v369_v49 = vrot.slane %v368_v24, 2 }
  0x45   : > { %v382_v54 = vrot.slane %v381_v42, 2  ;;  %v395_v59 = vrot.slane %v394_v43, 2  ;;  %v407_v60 = vmax.f32 %v405_v19, %v406_v44  ;;  %v420_v61 = vmax.f32 %v418_v20, %v419_v45  ;;  %v344_v44 = vld [vmem:[%s1153_s8 + $0x370] sm:$0x1] }
  0x46   : > { %v433_v50 = vmax.f32 %v431_v21, %v432_v46  ;;  %v446_v51 = vmax.f32 %v444_v22, %v445_v47  ;;  %v357_v52 = vmax.f32 %v355_v23, %v356_v48  ;;  %v370_v53 = vmax.f32 %v368_v24, %v369_v49  ;;  %v342_v21 = vld [vmem:[%s1153_s8 + $0x360] sm:$0x1]  ;;  %v343_v22 = vld [vmem:[%s1153_s8 + $0x368] sm:$0x1]  ;;  %v345_v49 = vld [vmem:[%s1153_s8 + $0x378] sm:$0x1]  ;;  %s1621_s8 = scalar_lea.hbm %s1665_s4, %s925_s27 }
  0x47   : > { %v383_v2 = vmax.f32 %v381_v42, %v382_v54  ;;  %v396_v3 = vmax.f32 %v394_v43, %v395_v59  ;;  %v408_v4 = vrot.slane %v407_v60, 2  ;;  %v421_v5 = vrot.slane %v420_v61, 2 }
  0x48   : > { %v434_v6 = vrot.slane %v433_v50, 2  ;;  %v447_v7 = vrot.slane %v446_v51, 2  ;;  %v358_v9 = vrot.slane %v357_v52, 1  ;;  %v371_v10 = vrot.slane %v370_v53, 1 }
  0x49   : > { %v384_v11 = vrot.slane %v383_v2, 1  ;;  %v397_v13 = vrot.slane %v396_v3, 1  ;;  %v409_v17 = vmax.f32 %v407_v60, %v408_v4  ;;  %v422_v18 = vmax.f32 %v420_v61, %v421_v5 }
  0x4a   : > { %v435_v19 = vmax.f32 %v433_v50, %v434_v6  ;;  %v448_v20 = vmax.f32 %v446_v51, %v447_v7  ;;  %v1500_v23 = vmax.f32 %v357_v52, %v358_v9  ;;  %v1502_v24 = vmax.f32 %v370_v53, %v371_v10 }
  0x4b   : > { %v1504_v42 = vmax.f32 %v383_v2, %v384_v11  ;;  %v1506_v43 = vmax.f32 %v396_v3, %v397_v13  ;;  %v410_v45 = vrot.slane %v409_v17, 1  ;;  %v423_v46 = vrot.slane %v422_v18, 1 }
  0x4c   : > { %v436_v47 = vrot.slane %v435_v19, 1  ;;  %v449_v48 = vrot.slane %v448_v20, 1  ;;  %v456_v54 = vsel %vm351_vm0, %v338_v8, -inf  ;;  %v469_v59 = vsel %vm351_vm0, %v339_v14, -inf }
  0x4d   : > { %v482_v60 = vsel %vm351_vm0, %v340_v15, -inf  ;;  %v495_v61 = vsel %vm351_vm0, %v341_v16, -inf  ;;  %v1514_v50 = vmax.f32 %v409_v17, %v410_v45  ;;  %v1516_v51 = vmax.f32 %v422_v18, %v423_v46 }
  0x4e   : > { %v1518_v52 = vmax.f32 %v435_v19, %v436_v47  ;;  %v1520_v53 = vmax.f32 %v448_v20, %v449_v48  ;;  %v457_v2 = vmax.f32 %v455_v55, %v456_v54  ;;  %v470_v3 = vmax.f32 %v468_v56, %v469_v59 }
  0x4f   : > { %v483_v4 = vmax.f32 %v481_v57, %v482_v60  ;;  %v496_v5 = vmax.f32 %v494_v58, %v495_v61  ;;  %v508_v6 = vsel %vm351_vm0, %v342_v21, -inf  ;;  %v521_v7 = vsel %vm351_vm0, %v343_v22, -inf }
  0x50   : > { %v534_v8 = vsel %vm351_vm0, %v344_v44, -inf  ;;  %v547_v25 = vsel %vm351_vm0, %v345_v49, -inf  ;;  %v458_v28 = vrot.slane %v457_v2, 4  ;;  %v471_v55 = vrot.slane %v470_v3, 4 }
  0x51   : > { %v484_v26 = vrot.slane %v483_v4, 4  ;;  %v497_v29 = vrot.slane %v496_v5, 4  ;;  %v509_v27 = vmax.f32 %v507_v62, %v508_v6  ;;  %v522_v30 = vmax.f32 %v520_v63, %v521_v7 }
  0x52   : > { %v535_v31 = vmax.f32 %v533_v0, %v534_v8  ;;  %v548_v32 = vmax.f32 %v546_v1, %v547_v25  ;;  %v459_v56 = vmax.f32 %v457_v2, %v458_v28  ;;  %v472_v57 = vmax.f32 %v470_v3, %v471_v55 }
  0x53   : > { %v485_v58 = vmax.f32 %v483_v4, %v484_v26  ;;  %v498_v9 = vmax.f32 %v496_v5, %v497_v29  ;;  %v510_v10 = vrot.slane %v509_v27, 4  ;;  %v523_v11 = vrot.slane %v522_v30, 4 }
  0x54   : > { %v536_v33 = vrot.slane %v535_v31, 4  ;;  %v549_v35 = vrot.slane %v548_v32, 4  ;;  %v460_v62 = vrot.slane %v459_v56, 2  ;;  %v473_v13 = vrot.slane %v472_v57, 2 }
  0x55   : > { %v486_v34 = vrot.slane %v485_v58, 2  ;;  %v499_v36 = vrot.slane %v498_v9, 2  ;;  %v511_v63 = vmax.f32 %v509_v27, %v510_v10  ;;  %v524_v14 = vmax.f32 %v522_v30, %v523_v11 }
  0x56   : > { %v537_v37 = vmax.f32 %v535_v31, %v536_v33  ;;  %v550_v39 = vmax.f32 %v548_v32, %v549_v35  ;;  %v461_v0 = vmax.f32 %v459_v56, %v460_v62  ;;  %v474_v15 = vmax.f32 %v472_v57, %v473_v13 }
  0x57   : > { %v487_v38 = vmax.f32 %v485_v58, %v486_v34  ;;  %v500_v40 = vmax.f32 %v498_v9, %v499_v36  ;;  %v512_v1 = vrot.slane %v511_v63, 2  ;;  %v525_v16 = vrot.slane %v524_v14, 2 }
  0x58   : > { %v538_v17 = vrot.slane %v537_v37, 2  ;;  %v551_v18 = vrot.slane %v550_v39, 2  ;;  %v462_v19 = vrot.slane %v461_v0, 1  ;;  %v475_v20 = vrot.slane %v474_v15, 1 }
  0x59   : > { %v488_v21 = vrot.slane %v487_v38, 1  ;;  %v501_v22 = vrot.slane %v500_v40, 1  ;;  %v513_v44 = vmax.f32 %v511_v63, %v512_v1  ;;  %v526_v45 = vmax.f32 %v524_v14, %v525_v16 }
  0x5a   : > { %v539_v46 = vmax.f32 %v537_v37, %v538_v17  ;;  %v552_v47 = vmax.f32 %v550_v39, %v551_v18  ;;  %v463_v48 = vmax.f32 %v461_v0, %v462_v19  ;;  %v476_v49 = vmax.f32 %v474_v15, %v475_v20 }
  0x5b   : > { %v489_v54 = vmax.f32 %v487_v38, %v488_v21  ;;  %v502_v59 = vmax.f32 %v500_v40, %v501_v22  ;;  %v514_v60 = vrot.slane %v513_v44, 1  ;;  %v527_v61 = vrot.slane %v526_v45, 1 }
  0x5c   : > { %v540_v2 = vrot.slane %v539_v46, 1  ;;  %v553_v3 = vrot.slane %v552_v47, 1  ;;  %v573_v4 = vcombine.low %v1500_v23, %v1502_v24  ;;  %v574_v5 = vcombine.low %v1504_v42, %v1506_v43 }
  0x5d   : > { %v575_v6 = vcombine.low %v1514_v50, %v1516_v51  ;;  %v576_v7 = vcombine.low %v1518_v52, %v1520_v53  ;;  %v515_v8 = vmax.f32 %v513_v44, %v514_v60  ;;  %v528_v25 = vmax.f32 %v526_v45, %v527_v61 }
  0x5e   : > { %v541_v28 = vmax.f32 %v539_v46, %v540_v2  ;;  %v554_v55 = vmax.f32 %v552_v47, %v553_v3  ;;  %v583_v26 = vrot.slane %v573_v4, %v1258_v41  ;;  %v590_v29 = vrot.slane %v574_v5, %v1258_v41 }
  0x5f   : > { %v597_v27 = vrot.slane %v575_v6, %v1258_v41  ;;  %v604_v23 = vrot.slane %v576_v7, %v1258_v41  ;;  %v622_v24 = vcombine.low %v463_v48, %v476_v49  ;;  %v623_v42 = vcombine.low %v489_v54, %v502_v59 }
  0x60   : > { %v624_v43 = vcombine.low %v515_v8, %v528_v25  ;;  %v625_v30 = vcombine.low %v541_v28, %v554_v55  ;;  %v605_v50 = vcombine.low %v583_v26, %v590_v29  ;;  %v1569_v9 = vsub.s32 0, %v1179_v12 }
  0x61   : > { %v606_v51 = vcombine.low %v597_v27, %v604_v23  ;;  %v632_v52 = vrot.slane %v622_v24, %v1258_v41  ;;  %v639_v53 = vrot.slane %v623_v42, %v1258_v41  ;;  %v692_v33 = vsub.s32 1, %v1179_v12 }
  0x62   : > { %v646_v31 = vrot.slane %v624_v43, %v1258_v41  ;;  %v653_v32 = vrot.slane %v625_v30, %v1258_v41  ;;  %v613_v56 = vrot.slane %v605_v50, %v1258_v41  ;;  %v696_v35 = vsub.s32 2, %v1179_v12 }
  0x63   : > { %v620_v57 = vrot.slane %v606_v51, %v1258_v41  ;;  %v654_v58 = vcombine.low %v632_v52, %v639_v53  ;;  %v700_v13 = vsub.s32 3, %v1179_v12  ;;  %v704_v36 = vsub.s32 4, %v1179_v12 }
  0x64   : > { %v655_v11 = vcombine.low %v646_v31, %v653_v32  ;;  %v708_v15 = vsub.s32 5, %v1179_v12  ;;  %v712_v17 = vsub.s32 6, %v1179_v12 }
  0x65   : > { %v1571_v10 = vcombine.low %v613_v56, %v620_v57  ;;  %v662_v34 = vrot.slane %v654_v58, %v1258_v41 }
  0x66   : > { %v669_v63 = vrot.slane %v655_v11, %v1258_v41  ;;  %v716_v41 = vsub.s32 7, %v1179_v12  ;;  %v802_v11 = vstv %s799_s9  ;;  %s823_s9 = scalar_lea.sflag [#allocation5], %s214_s10 }
  0x67   : > { %v682_v62 = vmul.f32 %v1571_v10, %v1571_v10 }
  0x68   : > { %v670_v1 = vcombine.low %v662_v34, %v669_v63  ;;  %v813_v34 = vld [vmem:[%s1663_s2 + $0x8] sm:$0xff] }
  0x69   : > { %v689_v14 = vrot.slane %v682_v62, %v1569_v9  ;;  %v693_v37 = vrot.slane %v682_v62, %v692_v33  ;;  %v697_v39 = vrot.slane %v682_v62, %v696_v35  ;;  %v701_v0 = vrot.slane %v682_v62, %v700_v13 }
  0x6a   : > { %v705_v16 = vrot.slane %v682_v62, %v704_v36  ;;  %v709_v20 = vrot.slane %v682_v62, %v708_v15  ;;  %v683_v44 = vmul.f32 %v670_v1, %v670_v1  ;;  %v713_v45 = vrot.slane %v682_v62, %v712_v17 }
  0x6b   : > { %v766_v38 = vsel %vm351_vm0, %v689_v14, 0.0  ;;  %v767_v40 = vsel %vm351_vm0, %v693_v37, 0.0  ;;  %v769_v18 = vsel %vm351_vm0, %v697_v39, 0.0  ;;  %v771_v21 = vsel %vm351_vm0, %v701_v0, 0.0  ;;  %v816_v14 = vld [vmem:[%s1664_s3] sm:$0xff] }
  0x6c   : > { %v768_v19 = vadd.f32 %v767_v40, %v766_v38  ;;  %v773_v46 = vsel %vm351_vm0, %v705_v16, 0.0  ;;  %v717_v48 = vrot.slane %v682_v62, %v716_v41  ;;  %v775_v49 = vsel %vm351_vm0, %v709_v20, 0.0 }
  0x6d   : > { %v721_v59 = vrot.slane %v683_v44, %v1569_v9  ;;  %v777_v60 = vsel %vm351_vm0, %v713_v45, 0.0  ;;  %v725_v2 = vrot.slane %v683_v44, %v692_v33  ;;  %v729_v4 = vrot.slane %v683_v44, %v696_v35 }
  0x6e   : > { %v770_v22 = vadd.f32 %v769_v18, %v768_v19  ;;  %v779_v12 = vsel %vm351_vm0, %v717_v48, 0.0  ;;  %v733_v7 = vrot.slane %v683_v44, %v700_v13  ;;  %v737_v28 = vrot.slane %v683_v44, %v704_v36  ;;  %v812_v13 = vld [vmem:[%s1663_s2] sm:$0xff] }
  0x6f   : > { %v781_v5 = vsel %vm351_vm0, %v721_v59, 0.0  ;;  %v783_v8 = vsel %vm351_vm0, %v725_v2, 0.0  ;;  %v785_v55 = vsel %vm351_vm0, %v729_v4, 0.0  ;;  %v741_v29 = vrot.slane %v683_v44, %v708_v15 }
  0x70   : > { %v772_v47 = vadd.f32 %v771_v21, %v770_v22  ;;  %v787_v27 = vsel %vm351_vm0, %v733_v7, 0.0  ;;  %v745_v24 = vrot.slane %v683_v44, %v712_v17  ;;  %v789_v42 = vsel %vm351_vm0, %v737_v28, 0.0 }
  0x71   : > { %v749_v30 = vrot.slane %v683_v44, %v716_v41  ;;  %v791_v50 = vsel %vm351_vm0, %v741_v29, 0.0 }
  0x72   : > { %v774_v54 = vadd.f32 %v773_v46, %v772_v47  ;;  %v793_v52 = vsel %vm351_vm0, %v745_v24, 0.0 }
  0x73   : > { %v795_v31 = vsel %vm351_vm0, %v749_v30, 0.0 }
  0x74   : > { %v776_v61 = vadd.f32 %v775_v49, %v774_v54 }
  0x76   : > { %v778_v3 = vadd.f32 %v777_v60, %v776_v61 }
  0x78   : > { %v780_v6 = vadd.f32 %v779_v12, %v778_v3 }
  0x7a   : > { %v782_v25 = vadd.f32 %v781_v5, %v780_v6 }
  0x7c   : > { %v784_v26 = vadd.f32 %v783_v8, %v782_v25 }
  0x7e   : > { %v786_v23 = vadd.f32 %v785_v55, %v784_v26 }
  0x80   : > { %v788_v43 = vadd.f32 %v787_v27, %v786_v23 }
  0x82   : > { %v790_v51 = vadd.f32 %v789_v42, %v788_v43 }
  0x84   : > { %v792_v53 = vadd.f32 %v791_v50, %v790_v51 }
  0x86   : > { %v794_v32 = vadd.f32 %v793_v52, %v792_v53 }
  0x88   : > { %v796_v56 = vadd.f32 %v795_v31, %v794_v32 }
  0x8a   : > { %797 = vadd.xlane.f32.xlu0 %v796_v56 }
 0x113   : > { %v798_v57 = vpop.xlane.xlu0 %797 }
 0x114   : > { %v800_v58 = vmax.f32 %v798_v57, 1e-24 }
 0x116   : > { %983 = vrsqrt.f32 %v800_v58 }
 0x123   : > { %v984_v33 = vpop.eup %983 }
 0x124   : > { %v803_v35 = vmul.f32 %v984_v33, %v802_v11 }
 0x126   : > { %v808_v62 = vrot.slane %v803_v35, %v1569_v9  ;;  %v817_v9 = vld [vmem:[%s1664_s3 + $0x8] sm:$0xff] }
 0x128   : > { %v810_v36 = vmul.f32 %v808_v62, %v1571_v10  ;;  %v811_v63 = vmul.f32 %v808_v62, %v670_v1 }
 0x12a   : > { %v814_v37 = vmul.f32 %v812_v13, %v810_v36  ;;  %v815_v39 = vmul.f32 %v813_v34, %v811_v63 }
 0x12c   : > { %v818_v0 = vadd.f32 %v816_v14, %v814_v37  ;;  %v819_v15 = vadd.f32 %v817_v9, %v815_v39 }
 0x12e   : > { %820 = vst [vmem:[%s216_s30] sm:$0xff] %v818_v0  ;;  %821 = vst [vmem:[%s216_s30 + $0x8] sm:$0xff] %v819_v15 }
 0x12f   : > { %998 = shalt.err (!%p995_p5)
}
 0x130   : > { %s999_s14 = scalar_lea.hbm %s1621_s8, 256  ;;  %s1003_s16 = scalar_lea.hbm %s1665_s4, 512 }
 0x131   : > { %p1000_p6 = scmp.ne.s32.totalorder %s1621_s8, %s999_s14  ;;  %p1004_p10 = scmp.lt.s32.totalorder %s1621_s8, %s1665_s4 }
 0x132   : > { %p1005_p11 = scmp.lt.s32.totalorder %s1003_s16, %s999_s14 }
 0x133   : > { %p1001_p7 = pnand %p1000_p6, %p1133_p4 }
 0x134   : > { %p1006_p12 = por %p1005_p11, %p1004_p10 }
 0x135   : > { %p1002_p9 = pneg %p1001_p7 }
 0x137   : > { %p1007_p13 = pnand %p1006_p12, %p1002_p9 }
 0x139   : > { %1010 = shalt.err (!%p1007_p13)
}
 0x13a   : > { %927 = dma.vmem_to_hbm [thread:$0]  (%p1133_p4), %s838_s5, 256, %s1621_s8, %s823_s9  }
 0x13b PF: > { %p933_p0 = scmp.ge.s32.totalorder %s1061_s22, 2  ;;  %s849_s25 = sand.u32 1, %s1041_s17  }
 0x13c   : > { %s850_s27 = scalar_lea.sflag [#allocation5], %s849_s25 }
 0x13d   : > { %p930_p1 = pnand %p933_p0, %p1140_p8 }
 0x13f   : > { %p931_p2 = pneg %p930_p1 }
 0x141   : > { %1036 = dma.done.wait (%p931_p2), %s850_s27, 256  }
 0x142   : > { %1038 = vsyncadd (%p931_p2), %s850_s27, 4294967040  ;;  %s18_s22 = sadd.s32 1, %s1061_s22   ;;  %s1668_s17 = smov %s1045_s18 }
 0x143   : > { %p15_p3 = scmp.ge.s32.totalorder %s18_s22, 4   ;;  %s1669_s18 = smov %s1049_s19 }
 0x144   : > { %s1670_s19 = smov %s1146_s29  ;;  %s1671_s20 = smov %s1057_s21 }
 0x145   : > { %s1672_s21 = smov %s1674_s24  ;;  %17 = sbr.rel (!%p15_p3) target bundleno = 6 (0x6), region = 79 }
 0x14a   :  { %855 = vsyncpa [#allocation5], 1 }
 0x14b   :  { %857 = vsyncpa [#allocation5 + $0x1], 1 }

</bundles_post_ra>
